<compile_context>
chip_gen: v5e
topology: v5e:2x2
jax: 0.10.0
libtpu: 0.0.40
codegen_flags: <defaults>
</compile_context>

<pallas_src>
import math
from functools import partial

import jax
import jax.numpy as jnp
from jax.experimental import pallas as pl
from jax.experimental.pallas import tpu as pltpu

# ----- model config (small, deterministic) ----------------------------------
BATCH = 2
SEQ = 8
EMB = 32
NUM_HEADS = 4
HEAD_DIM = EMB // NUM_HEADS
FF_DIM = 4 * EMB
EPS = 1e-5
GELU_C = math.sqrt(2.0 / math.pi)
NEG_INF = -1e30   # finite "minus infinity": diagonal is always allowed, so no
                  # fully-masked row can occur -> never produces NaN.


def _layer_norm(v, g, b):
    mean = jnp.mean(v, axis=-1, keepdims=True)
    var = jnp.mean((v - mean) ** 2, axis=-1, keepdims=True)   # unbiased=False
    return (v - mean) * jax.lax.rsqrt(var + EPS) * g + b


# ----- Pallas kernel ----------------------------------------------------------
def transformer_block_kernel(
    x_ref,
    ln1_g_ref, ln1_b_ref,
    w_qkv_ref, b_qkv_ref, wo_ref, bo_ref,
    ln2_g_ref, ln2_b_ref,
    w1_ref, b1_ref, w2_ref, b2_ref,
    o_ref,
    *, num_heads, head_dim,
):
    x = x_ref[...]                                   # (S, D) f32, one batch item
    S, D = x.shape
    H, hd = num_heads, head_dim

    # ---- sub-block 1: LayerNorm -> causal multi-head attention -> residual ----
    h = _layer_norm(x, ln1_g_ref[...], ln1_b_ref[...])          # (S, D) f32

    # Fused QKV projection: single MXU matmul, bf16 operands, f32 accumulation.
    qkv = jnp.dot(h.astype(jnp.bfloat16), w_qkv_ref[...],
                  preferred_element_type=jnp.float32) + b_qkv_ref[...]   # (S, 3D)

    scale = 1.0 / math.sqrt(hd)
    q = qkv[:, 0 * D:1 * D] * scale      # 1/sqrt(hd) folded into q (S*D mults)
    k = qkv[:, 1 * D:2 * D]
    v = qkv[:, 2 * D:3 * D]

    # Head split: static lane slices stacked on a NEW leading head axis so the
    # attention matmuls are head-batched dot_generals with a leading batch dim.
    qh = jnp.stack([q[:, i * hd:(i + 1) * hd] for i in range(H)], axis=0)
    kh = jnp.stack([k[:, i * hd:(i + 1) * hd] for i in range(H)], axis=0)
    vh = jnp.stack([v[:, i * hd:(i + 1) * hd] for i in range(H)], axis=0)
    qh = qh.astype(jnp.bfloat16)                                 # (H, S, hd)
    kh = kh.astype(jnp.bfloat16)
    vh = vh.astype(jnp.bfloat16)

    # Per-head scores, f32 accumulation.
    scores = jnp.einsum("hqe,hke->hqk", qh, kh,
                        preferred_element_type=jnp.float32)      # (H, S, S)

    # Causal mask applied in-register (no materialized f32 bias buffer).
    rows = jax.lax.broadcasted_iota(jnp.int32, (S, S), 0)
    cols = jax.lax.broadcasted_iota(jnp.int32, (S, S), 1)
    scores = jnp.where((cols <= rows)[None], scores, NEG_INF)

    # Softmax with DEFERRED normalization (normalize ctx, not p).
    m_max = jnp.max(scores, axis=-1, keepdims=True)
    p = jnp.exp(scores - m_max)                                  # masked -> exactly 0
    denom = jnp.sum(p, axis=-1, keepdims=True)                   # (H, S, 1)

    ctx = jnp.einsum("hqk,hke->hqe", p.astype(jnp.bfloat16), vh,
                     preferred_element_type=jnp.float32)         # (H, S, hd)
    ctx = ctx * pl.reciprocal(denom, approx=True)                # EUP slot

    # Heads back to the contiguous minor axis, then ONE (S,D)x(D,D) output proj.
    ctx2d = jnp.concatenate([ctx[i] for i in range(H)], axis=-1)  # (S, D)
    attn = jnp.dot(ctx2d.astype(jnp.bfloat16), wo_ref[...],
                   preferred_element_type=jnp.float32) + bo_ref[...]

    # drop_shortcut / attention dropout are identity in eval mode.
    # TODO(synk): training-mode dropout via pltpu.prng_* if ever needed.
    x1 = x + attn

    # ---- sub-block 2: LayerNorm -> FeedForward (GELU tanh approx) -> residual --
    h2 = _layer_norm(x1, ln2_g_ref[...], ln2_b_ref[...])
    ff = jnp.dot(h2.astype(jnp.bfloat16), w1_ref[...],
                 preferred_element_type=jnp.float32) + b1_ref[...]
    ff = 0.5 * ff * (1.0 + jnp.tanh(GELU_C * (ff + 0.044715 * ff ** 3)))
    ff = jnp.dot(ff.astype(jnp.bfloat16), w2_ref[...],
                 preferred_element_type=jnp.float32) + b2_ref[...]

    o_ref[...] = x1 + ff


# ----- wrapper ----------------------------------------------------------------
def _resident_spec(shape):
    """Whole-array block that never changes across the grid -> single DMA."""
    n = len(shape)
    return pl.BlockSpec(shape, lambda b, n=n: (0,) * n)


def transformer_block(x, params):
    B, S, D = x.shape
    H, hd = NUM_HEADS, HEAD_DIM
    F = FF_DIM

    # Fused QKV weight (head-major column order matches the per-head slicing
    # in the kernel).  MXU weight operands cast to bf16 (f32 accumulation in
    # the kernel); biases / LN params stay f32 for the elementwise path.
    w_qkv = jnp.concatenate(
        [params["wq"], params["wk"], params["wv"]], axis=1).astype(jnp.bfloat16)
    b_qkv = jnp.concatenate(
        [params["bq"], params["bk"], params["bv"]], axis=1)      # (1, 3D) f32
    wo = params["wo"].astype(jnp.bfloat16)
    w1 = params["w1"].astype(jnp.bfloat16)
    w2 = params["w2"].astype(jnp.bfloat16)

    kernel = partial(transformer_block_kernel, num_heads=H, head_dim=hd)

    in_specs = [
        pl.BlockSpec((None, S, D), lambda b: (b, 0, 0)),         # x (per batch)
        _resident_spec((1, D)), _resident_spec((1, D)),          # ln1 g, b
        _resident_spec((D, 3 * D)), _resident_spec((1, 3 * D)),  # w_qkv, b_qkv
        _resident_spec((D, D)), _resident_spec((1, D)),          # wo, bo
        _resident_spec((1, D)), _resident_spec((1, D)),          # ln2 g, b
        _resident_spec((D, F)), _resident_spec((1, F)),          # w1, b1
        _resident_spec((F, D)), _resident_spec((1, D)),          # w2, b2
    ]

    out = pl.pallas_call(
        kernel,
        out_shape=jax.ShapeDtypeStruct((B, S, D), jnp.float32),
        grid=(B,),
        in_specs=in_specs,
        out_specs=pl.BlockSpec((None, S, D), lambda b: (b, 0, 0)),
        compiler_params=pltpu.CompilerParams(
            dimension_semantics=("parallel",)),                  # 2 TCs on v7x
    )(x, params["ln1_g"], params["ln1_b"],
      w_qkv, b_qkv, wo, params["bo"],
      params["ln2_g"], params["ln2_b"],
      w1, params["b1"], w2, params["b2"])
    return out


# ----- pure-JAX f32 reference (for correctness check) -------------------------
def reference_block(x, params):
    def ln(v, g, b):
        mean = jnp.mean(v, axis=-1, keepdims=True)
        var = jnp.mean((v - mean) ** 2, axis=-1, keepdims=True)
        return (v - mean) / jnp.sqrt(var + EPS) * g + b

    B, S, D = x.shape
    h = ln(x, params["ln1_g"], params["ln1_b"])
    q = h @ params["wq"] + params["bq"]
    k = h @ params["wk"] + params["bk"]
    v = h @ params["wv"] + params["bv"]

    def split(t):  # (B,S,D) -> (B,H,S,hd)
        return t.reshape(B, S, NUM_HEADS, HEAD_DIM).transpose(0, 2, 1, 3)

    qh, kh, vh = split(q), split(k), split(v)
    scores = jnp.einsum("bhqd,bhkd->bhqk", qh, kh) / math.sqrt(HEAD_DIM)
    mask = jnp.tril(jnp.ones((S, S), dtype=bool))
    scores = jnp.where(mask, scores, -jnp.inf)
    p = jax.nn.softmax(scores, axis=-1)
    ctx = jnp.einsum("bhqk,bhkd->bhqd", p, vh).transpose(0, 2, 1, 3).reshape(B, S, D)
    attn_out = ctx @ params["wo"] + params["bo"]
    x1 = x + attn_out

    h2 = ln(x1, params["ln2_g"], params["ln2_b"])
    ff = h2 @ params["w1"] + params["b1"]
    ff = 0.5 * ff * (1.0 + jnp.tanh(GELU_C * (ff + 0.044715 * ff ** 3)))
    ff = ff @ params["w2"] + params["b2"]
    return x1 + ff


# ----- deterministic parameter init -------------------------------------------
def init_params(key):
    ks = jax.random.split(key, 8)
    std = 0.02
    return {
        "ln1_g": jnp.ones((1, EMB), jnp.float32),
        "ln1_b": jnp.zeros((1, EMB), jnp.float32),
        "ln2_g": jnp.ones((1, EMB), jnp.float32),
        "ln2_b": jnp.zeros((1, EMB), jnp.float32),
        "wq": std * jax.random.normal(ks[0], (EMB, EMB), jnp.float32),
        "wk": std * jax.random.normal(ks[1], (EMB, EMB), jnp.float32),
        "wv": std * jax.random.normal(ks[2], (EMB, EMB), jnp.float32),
        "wo": std * jax.random.normal(ks[3], (EMB, EMB), jnp.float32),
        "bq": jnp.full((1, EMB), 0.01, jnp.float32),
        "bk": jnp.full((1, EMB), -0.01, jnp.float32),
        "bv": jnp.full((1, EMB), 0.02, jnp.float32),
        "bo": jnp.zeros((1, EMB), jnp.float32),
        "w1": std * jax.random.normal(ks[4], (EMB, FF_DIM), jnp.float32),
        "b1": jnp.zeros((1, FF_DIM), jnp.float32),
        "w2": std * jax.random.normal(ks[5], (FF_DIM, EMB), jnp.float32),
        "b2": jnp.zeros((1, EMB), jnp.float32),
    }


if __name__ == "__main__":
    key = jax.random.PRNGKey(0)
    kx, kp = jax.random.split(key)
    x = jax.random.normal(kx, (BATCH, SEQ, EMB), jnp.float32)
    params = init_params(kp)

    out = transformer_block(x, params)
    out = jax.block_until_ready(out)

    ref = reference_block(x, params)
    assert out.shape == (BATCH, SEQ, EMB)
    # bf16 MXU operands (f32 accumulation) + approx reciprocal vs a pure-f32
    # reference -> tolerance sized for bf16 mantissa (~3 decimal digits).
    assert jnp.allclose(out, ref, rtol=1e-2, atol=1e-2), "mismatch vs reference"

    print("KERNEL_OK")
</pallas_src>

<mosaic_0001>
module attributes {stable_mosaic.version = 11 : i64} {
  func.func @transformer_block_kernel(%arg0: i32, %arg1: memref<1x8x32xf32, #tpu.memory_space<vmem>>, %arg2: memref<1x32xf32, #tpu.memory_space<vmem>>, %arg3: memref<1x32xf32, #tpu.memory_space<vmem>>, %arg4: memref<32x96xbf16, #tpu.memory_space<vmem>>, %arg5: memref<1x96xf32, #tpu.memory_space<vmem>>, %arg6: memref<32x32xbf16, #tpu.memory_space<vmem>>, %arg7: memref<1x32xf32, #tpu.memory_space<vmem>>, %arg8: memref<1x32xf32, #tpu.memory_space<vmem>>, %arg9: memref<1x32xf32, #tpu.memory_space<vmem>>, %arg10: memref<32x128xbf16, #tpu.memory_space<vmem>>, %arg11: memref<1x128xf32, #tpu.memory_space<vmem>>, %arg12: memref<128x32xbf16, #tpu.memory_space<vmem>>, %arg13: memref<1x32xf32, #tpu.memory_space<vmem>>, %arg14: memref<1x8x32xf32, #tpu.memory_space<vmem>>) attributes {dimension_semantics = [#tpu.dimension_semantics<parallel>], iteration_bounds = array<i64: 2>, scalar_prefetch = 0 : i64, scratch_operands = 0 : i64, tpu.core_type = #tpu.core_type<tc>, window_params = [{transform_indices = @transform_0, window_bounds = array<i64: 1, 8, 32>}, {pipeline_mode = #tpu.pipeline_mode<synchronous>, transform_indices = @transform_1, window_bounds = array<i64: 1, 32>}, {pipeline_mode = #tpu.pipeline_mode<synchronous>, transform_indices = @transform_2, window_bounds = array<i64: 1, 32>}, {pipeline_mode = #tpu.pipeline_mode<synchronous>, transform_indices = @transform_3, window_bounds = array<i64: 32, 96>}, {pipeline_mode = #tpu.pipeline_mode<synchronous>, transform_indices = @transform_4, window_bounds = array<i64: 1, 96>}, {pipeline_mode = #tpu.pipeline_mode<synchronous>, transform_indices = @transform_5, window_bounds = array<i64: 32, 32>}, {pipeline_mode = #tpu.pipeline_mode<synchronous>, transform_indices = @transform_6, window_bounds = array<i64: 1, 32>}, {pipeline_mode = #tpu.pipeline_mode<synchronous>, transform_indices = @transform_7, window_bounds = array<i64: 1, 32>}, {pipeline_mode = #tpu.pipeline_mode<synchronous>, transform_indices = @transform_8, window_bounds = array<i64: 1, 32>}, {pipeline_mode = #tpu.pipeline_mode<synchronous>, transform_indices = @transform_9, window_bounds = array<i64: 32, 128>}, {pipeline_mode = #tpu.pipeline_mode<synchronous>, transform_indices = @transform_10, window_bounds = array<i64: 1, 128>}, {pipeline_mode = #tpu.pipeline_mode<synchronous>, transform_indices = @transform_11, window_bounds = array<i64: 128, 32>}, {pipeline_mode = #tpu.pipeline_mode<synchronous>, transform_indices = @transform_12, window_bounds = array<i64: 1, 32>}, {transform_indices = @transform_13, window_bounds = array<i64: 1, 8, 32>}]} {
    %c0 = arith.constant 0 : index
    %c0_0 = arith.constant 0 : index
    %c0_1 = arith.constant 0 : index
    %0 = vector.load %arg1[%c0, %c0_0, %c0_1] : memref<1x8x32xf32, #tpu.memory_space<vmem>>, vector<1x8x32xf32>
    %1 = vector.shape_cast %0 : vector<1x8x32xf32> to vector<8x32xf32>
    %c0_2 = arith.constant 0 : index
    %c0_3 = arith.constant 0 : index
    %2 = vector.load %arg2[%c0_2, %c0_3] : memref<1x32xf32, #tpu.memory_space<vmem>>, vector<1x32xf32>
    %c0_4 = arith.constant 0 : index
    %c0_5 = arith.constant 0 : index
    %3 = vector.load %arg3[%c0_4, %c0_5] : memref<1x32xf32, #tpu.memory_space<vmem>>, vector<1x32xf32>
    %cst = arith.constant dense<0.000000e+00> : vector<8xf32>
    %4 = vector.multi_reduction <add>, %1, %cst [1] : vector<8x32xf32> to vector<8xf32>
    %5 = vector.shape_cast %4 : vector<8xf32> to vector<8x1xf32>
    %cst_6 = arith.constant 3.200000e+01 : f32
    %6 = vector.broadcast %cst_6 : f32 to vector<8x1xf32>
    %7 = arith.divf %5, %6 : vector<8x1xf32>
    %8 = vector.broadcast %7 : vector<8x1xf32> to vector<8x32xf32>
    %9 = arith.subf %1, %8 : vector<8x32xf32>
    %10 = arith.mulf %9, %9 : vector<8x32xf32>
    %cst_7 = arith.constant dense<0.000000e+00> : vector<8xf32>
    %11 = vector.multi_reduction <add>, %10, %cst_7 [1] : vector<8x32xf32> to vector<8xf32>
    %12 = vector.shape_cast %11 : vector<8xf32> to vector<8x1xf32>
    %cst_8 = arith.constant 3.200000e+01 : f32
    %13 = vector.broadcast %cst_8 : f32 to vector<8x1xf32>
    %14 = arith.divf %12, %13 : vector<8x1xf32>
    %15 = vector.broadcast %7 : vector<8x1xf32> to vector<8x32xf32>
    %16 = arith.subf %1, %15 : vector<8x32xf32>
    %cst_9 = arith.constant 9.99999974E-6 : f32
    %17 = vector.broadcast %cst_9 : f32 to vector<8x1xf32>
    %18 = arith.addf %14, %17 : vector<8x1xf32>
    %19 = math.rsqrt %18 : vector<8x1xf32>
    %20 = vector.broadcast %19 : vector<8x1xf32> to vector<8x32xf32>
    %21 = arith.mulf %16, %20 : vector<8x32xf32>
    %22 = vector.broadcast %2 : vector<1x32xf32> to vector<8x32xf32>
    %23 = arith.mulf %21, %22 : vector<8x32xf32>
    %24 = vector.broadcast %3 : vector<1x32xf32> to vector<8x32xf32>
    %25 = arith.addf %23, %24 : vector<8x32xf32>
    %26 = arith.truncf %25 : vector<8x32xf32> to vector<8x32xbf16>
    %c0_10 = arith.constant 0 : index
    %c0_11 = arith.constant 0 : index
    %27 = vector.load %arg4[%c0_10, %c0_11] : memref<32x96xbf16, #tpu.memory_space<vmem>>, vector<32x96xbf16>
    %cst_12 = arith.constant dense<0.000000e+00> : vector<8x96xf32>
    %28 = tpu.matmul %26, %27, %cst_12 {dimension_numbers = #tpu.dot_dimension_numbers<[1], [0], [0], [1], [0, 0, 1, 1], [], []>} : vector<8x32xbf16>, vector<32x96xbf16>, vector<8x96xf32> -> vector<8x96xf32>
    %c0_13 = arith.constant 0 : index
    %c0_14 = arith.constant 0 : index
    %29 = vector.load %arg5[%c0_13, %c0_14] : memref<1x96xf32, #tpu.memory_space<vmem>>, vector<1x96xf32>
    %30 = vector.broadcast %29 : vector<1x96xf32> to vector<8x96xf32>
    %31 = arith.addf %28, %30 : vector<8x96xf32>
    %32 = vector.extract_strided_slice %31 {offsets = [0, 0], sizes = [8, 32], strides = [1, 1]} : vector<8x96xf32> to vector<8x32xf32>
    %cst_15 = arith.constant 0.353553385 : f32
    %33 = vector.broadcast %cst_15 : f32 to vector<8x32xf32>
    %34 = arith.mulf %32, %33 : vector<8x32xf32>
    %35 = vector.extract_strided_slice %31 {offsets = [0, 32], sizes = [8, 32], strides = [1, 1]} : vector<8x96xf32> to vector<8x32xf32>
    %36 = vector.extract_strided_slice %31 {offsets = [0, 64], sizes = [8, 32], strides = [1, 1]} : vector<8x96xf32> to vector<8x32xf32>
    %37 = vector.extract_strided_slice %34 {offsets = [0, 0], sizes = [8, 8], strides = [1, 1]} : vector<8x32xf32> to vector<8x8xf32>
    %38 = vector.extract_strided_slice %34 {offsets = [0, 8], sizes = [8, 8], strides = [1, 1]} : vector<8x32xf32> to vector<8x8xf32>
    %39 = vector.extract_strided_slice %34 {offsets = [0, 16], sizes = [8, 8], strides = [1, 1]} : vector<8x32xf32> to vector<8x8xf32>
    %40 = vector.extract_strided_slice %34 {offsets = [0, 24], sizes = [8, 8], strides = [1, 1]} : vector<8x32xf32> to vector<8x8xf32>
    %41 = vector.shape_cast %37 : vector<8x8xf32> to vector<1x8x8xf32>
    %42 = vector.shape_cast %38 : vector<8x8xf32> to vector<1x8x8xf32>
    %43 = vector.shape_cast %39 : vector<8x8xf32> to vector<1x8x8xf32>
    %44 = vector.shape_cast %40 : vector<8x8xf32> to vector<1x8x8xf32>
    %45 = tpu.concatenate %41, %42, %43, %44 in 0 : vector<1x8x8xf32>, vector<1x8x8xf32>, vector<1x8x8xf32>, vector<1x8x8xf32> -> vector<4x8x8xf32>
    %46 = vector.extract_strided_slice %35 {offsets = [0, 0], sizes = [8, 8], strides = [1, 1]} : vector<8x32xf32> to vector<8x8xf32>
    %47 = vector.extract_strided_slice %35 {offsets = [0, 8], sizes = [8, 8], strides = [1, 1]} : vector<8x32xf32> to vector<8x8xf32>
    %48 = vector.extract_strided_slice %35 {offsets = [0, 16], sizes = [8, 8], strides = [1, 1]} : vector<8x32xf32> to vector<8x8xf32>
    %49 = vector.extract_strided_slice %35 {offsets = [0, 24], sizes = [8, 8], strides = [1, 1]} : vector<8x32xf32> to vector<8x8xf32>
    %50 = vector.shape_cast %46 : vector<8x8xf32> to vector<1x8x8xf32>
    %51 = vector.shape_cast %47 : vector<8x8xf32> to vector<1x8x8xf32>
    %52 = vector.shape_cast %48 : vector<8x8xf32> to vector<1x8x8xf32>
    %53 = vector.shape_cast %49 : vector<8x8xf32> to vector<1x8x8xf32>
    %54 = tpu.concatenate %50, %51, %52, %53 in 0 : vector<1x8x8xf32>, vector<1x8x8xf32>, vector<1x8x8xf32>, vector<1x8x8xf32> -> vector<4x8x8xf32>
    %55 = vector.extract_strided_slice %36 {offsets = [0, 0], sizes = [8, 8], strides = [1, 1]} : vector<8x32xf32> to vector<8x8xf32>
    %56 = vector.extract_strided_slice %36 {offsets = [0, 8], sizes = [8, 8], strides = [1, 1]} : vector<8x32xf32> to vector<8x8xf32>
    %57 = vector.extract_strided_slice %36 {offsets = [0, 16], sizes = [8, 8], strides = [1, 1]} : vector<8x32xf32> to vector<8x8xf32>
    %58 = vector.extract_strided_slice %36 {offsets = [0, 24], sizes = [8, 8], strides = [1, 1]} : vector<8x32xf32> to vector<8x8xf32>
    %59 = vector.shape_cast %55 : vector<8x8xf32> to vector<1x8x8xf32>
    %60 = vector.shape_cast %56 : vector<8x8xf32> to vector<1x8x8xf32>
    %61 = vector.shape_cast %57 : vector<8x8xf32> to vector<1x8x8xf32>
    %62 = vector.shape_cast %58 : vector<8x8xf32> to vector<1x8x8xf32>
    %63 = tpu.concatenate %59, %60, %61, %62 in 0 : vector<1x8x8xf32>, vector<1x8x8xf32>, vector<1x8x8xf32>, vector<1x8x8xf32> -> vector<4x8x8xf32>
    %64 = arith.truncf %45 : vector<4x8x8xf32> to vector<4x8x8xbf16>
    %65 = arith.truncf %54 : vector<4x8x8xf32> to vector<4x8x8xbf16>
    %66 = arith.truncf %63 : vector<4x8x8xf32> to vector<4x8x8xbf16>
    "tpu.trace_start"() <{level = 10 : i32, message = "hqe,hke->hqk"}> : () -> ()
    %cst_16 = arith.constant dense<0.000000e+00> : vector<4x8x8xf32>
    %67 = tpu.matmul %64, %65, %cst_16 {dimension_numbers = #tpu.dot_dimension_numbers<[2], [2], [1], [1], [0, 0, 0, 1, 1, 1], [0], [0]>} : vector<4x8x8xbf16>, vector<4x8x8xbf16>, vector<4x8x8xf32> -> vector<4x8x8xf32>
    "tpu.trace_stop"() : () -> ()
    %68 = tpu.iota {dimensions = array<i32: 0>} : vector<8x8xi32>
    %69 = tpu.iota {dimensions = array<i32: 1>} : vector<8x8xi32>
    %70 = arith.cmpi sle, %69, %68 : vector<8x8xi32>
    %71 = vector.shape_cast %70 : vector<8x8xi1> to vector<1x8x8xi1>
    %cst_17 = arith.constant -1.000000e+30 : f32
    %72 = vector.shape_cast %71 : vector<1x8x8xi1> to vector<1x8x8xi1>
    %73 = vector.broadcast %72 : vector<1x8x8xi1> to vector<4x8x8xi1>
    %74 = vector.broadcast %cst_17 : f32 to vector<4x8x8xf32>
    %75 = arith.select %73, %67, %74 : vector<4x8x8xi1>, vector<4x8x8xf32>
    %cst_18 = arith.constant dense<0xFF800000> : vector<4x8xf32>
    %76 = vector.multi_reduction <maximumf>, %75, %cst_18 [2] : vector<4x8x8xf32> to vector<4x8xf32>
    %77 = vector.shape_cast %76 : vector<4x8xf32> to vector<4x8x1xf32>
    %78 = vector.broadcast %77 : vector<4x8x1xf32> to vector<4x8x8xf32>
    %79 = arith.subf %75, %78 : vector<4x8x8xf32>
    %80 = math.exp %79 : vector<4x8x8xf32>
    %cst_19 = arith.constant dense<0.000000e+00> : vector<4x8xf32>
    %81 = vector.multi_reduction <add>, %80, %cst_19 [2] : vector<4x8x8xf32> to vector<4x8xf32>
    %82 = vector.shape_cast %81 : vector<4x8xf32> to vector<4x8x1xf32>
    %83 = arith.truncf %80 : vector<4x8x8xf32> to vector<4x8x8xbf16>
    "tpu.trace_start"() <{level = 10 : i32, message = "hqk,hke->hqe"}> : () -> ()
    %cst_20 = arith.constant dense<0.000000e+00> : vector<4x8x8xf32>
    %84 = tpu.matmul %83, %66, %cst_20 {dimension_numbers = #tpu.dot_dimension_numbers<[2], [1], [1], [2], [0, 0, 0, 1, 1, 2], [0], [0]>} : vector<4x8x8xbf16>, vector<4x8x8xbf16>, vector<4x8x8xf32> -> vector<4x8x8xf32>
    "tpu.trace_stop"() : () -> ()
    %85 = tpu.reciprocal %82 {approx = true} : vector<4x8x1xf32> -> vector<4x8x1xf32>
    %86 = vector.broadcast %85 : vector<4x8x1xf32> to vector<4x8x8xf32>
    %87 = arith.mulf %84, %86 : vector<4x8x8xf32>
    %88 = vector.extract_strided_slice %87 {offsets = [0, 0, 0], sizes = [1, 8, 8], strides = [1, 1, 1]} : vector<4x8x8xf32> to vector<1x8x8xf32>
    %89 = vector.shape_cast %88 : vector<1x8x8xf32> to vector<8x8xf32>
    %90 = vector.extract_strided_slice %87 {offsets = [1, 0, 0], sizes = [1, 8, 8], strides = [1, 1, 1]} : vector<4x8x8xf32> to vector<1x8x8xf32>
    %91 = vector.shape_cast %90 : vector<1x8x8xf32> to vector<8x8xf32>
    %92 = vector.extract_strided_slice %87 {offsets = [2, 0, 0], sizes = [1, 8, 8], strides = [1, 1, 1]} : vector<4x8x8xf32> to vector<1x8x8xf32>
    %93 = vector.shape_cast %92 : vector<1x8x8xf32> to vector<8x8xf32>
    %94 = vector.extract_strided_slice %87 {offsets = [3, 0, 0], sizes = [1, 8, 8], strides = [1, 1, 1]} : vector<4x8x8xf32> to vector<1x8x8xf32>
    %95 = vector.shape_cast %94 : vector<1x8x8xf32> to vector<8x8xf32>
    %96 = tpu.concatenate %89, %91, %93, %95 in 1 : vector<8x8xf32>, vector<8x8xf32>, vector<8x8xf32>, vector<8x8xf32> -> vector<8x32xf32>
    %97 = arith.truncf %96 : vector<8x32xf32> to vector<8x32xbf16>
    %c0_21 = arith.constant 0 : index
    %c0_22 = arith.constant 0 : index
    %98 = vector.load %arg6[%c0_21, %c0_22] : memref<32x32xbf16, #tpu.memory_space<vmem>>, vector<32x32xbf16>
    %cst_23 = arith.constant dense<0.000000e+00> : vector<8x32xf32>
    %99 = tpu.matmul %97, %98, %cst_23 {dimension_numbers = #tpu.dot_dimension_numbers<[1], [0], [0], [1], [0, 0, 1, 1], [], []>} : vector<8x32xbf16>, vector<32x32xbf16>, vector<8x32xf32> -> vector<8x32xf32>
    %c0_24 = arith.constant 0 : index
    %c0_25 = arith.constant 0 : index
    %100 = vector.load %arg7[%c0_24, %c0_25] : memref<1x32xf32, #tpu.memory_space<vmem>>, vector<1x32xf32>
    %101 = vector.broadcast %100 : vector<1x32xf32> to vector<8x32xf32>
    %102 = arith.addf %99, %101 : vector<8x32xf32>
    %103 = arith.addf %1, %102 : vector<8x32xf32>
    %c0_26 = arith.constant 0 : index
    %c0_27 = arith.constant 0 : index
    %104 = vector.load %arg8[%c0_26, %c0_27] : memref<1x32xf32, #tpu.memory_space<vmem>>, vector<1x32xf32>
    %c0_28 = arith.constant 0 : index
    %c0_29 = arith.constant 0 : index
    %105 = vector.load %arg9[%c0_28, %c0_29] : memref<1x32xf32, #tpu.memory_space<vmem>>, vector<1x32xf32>
    %cst_30 = arith.constant dense<0.000000e+00> : vector<8xf32>
    %106 = vector.multi_reduction <add>, %103, %cst_30 [1] : vector<8x32xf32> to vector<8xf32>
    %107 = vector.shape_cast %106 : vector<8xf32> to vector<8x1xf32>
    %cst_31 = arith.constant 3.200000e+01 : f32
    %108 = vector.broadcast %cst_31 : f32 to vector<8x1xf32>
    %109 = arith.divf %107, %108 : vector<8x1xf32>
    %110 = vector.broadcast %109 : vector<8x1xf32> to vector<8x32xf32>
    %111 = arith.subf %103, %110 : vector<8x32xf32>
    %112 = arith.mulf %111, %111 : vector<8x32xf32>
    %cst_32 = arith.constant dense<0.000000e+00> : vector<8xf32>
    %113 = vector.multi_reduction <add>, %112, %cst_32 [1] : vector<8x32xf32> to vector<8xf32>
    %114 = vector.shape_cast %113 : vector<8xf32> to vector<8x1xf32>
    %cst_33 = arith.constant 3.200000e+01 : f32
    %115 = vector.broadcast %cst_33 : f32 to vector<8x1xf32>
    %116 = arith.divf %114, %115 : vector<8x1xf32>
    %117 = vector.broadcast %109 : vector<8x1xf32> to vector<8x32xf32>
    %118 = arith.subf %103, %117 : vector<8x32xf32>
    %cst_34 = arith.constant 9.99999974E-6 : f32
    %119 = vector.broadcast %cst_34 : f32 to vector<8x1xf32>
    %120 = arith.addf %116, %119 : vector<8x1xf32>
    %121 = math.rsqrt %120 : vector<8x1xf32>
    %122 = vector.broadcast %121 : vector<8x1xf32> to vector<8x32xf32>
    %123 = arith.mulf %118, %122 : vector<8x32xf32>
    %124 = vector.broadcast %104 : vector<1x32xf32> to vector<8x32xf32>
    %125 = arith.mulf %123, %124 : vector<8x32xf32>
    %126 = vector.broadcast %105 : vector<1x32xf32> to vector<8x32xf32>
    %127 = arith.addf %125, %126 : vector<8x32xf32>
    %128 = arith.truncf %127 : vector<8x32xf32> to vector<8x32xbf16>
    %c0_35 = arith.constant 0 : index
    %c0_36 = arith.constant 0 : index
    %129 = vector.load %arg10[%c0_35, %c0_36] : memref<32x128xbf16, #tpu.memory_space<vmem>>, vector<32x128xbf16>
    %cst_37 = arith.constant dense<0.000000e+00> : vector<8x128xf32>
    %130 = tpu.matmul %128, %129, %cst_37 {dimension_numbers = #tpu.dot_dimension_numbers<[1], [0], [0], [1], [0, 0, 1, 1], [], []>} : vector<8x32xbf16>, vector<32x128xbf16>, vector<8x128xf32> -> vector<8x128xf32>
    %c0_38 = arith.constant 0 : index
    %c0_39 = arith.constant 0 : index
    %131 = vector.load %arg11[%c0_38, %c0_39] : memref<1x128xf32, #tpu.memory_space<vmem>>, vector<1x128xf32>
    %132 = vector.broadcast %131 : vector<1x128xf32> to vector<8x128xf32>
    %133 = arith.addf %130, %132 : vector<8x128xf32>
    %cst_40 = arith.constant 5.000000e-01 : f32
    %134 = vector.broadcast %cst_40 : f32 to vector<8x128xf32>
    %135 = arith.mulf %134, %133 : vector<8x128xf32>
    %136 = arith.mulf %133, %133 : vector<8x128xf32>
    %137 = arith.mulf %133, %136 : vector<8x128xf32>
    %cst_41 = arith.constant 4.471500e-02 : f32
    %138 = vector.broadcast %cst_41 : f32 to vector<8x128xf32>
    %139 = arith.mulf %138, %137 : vector<8x128xf32>
    %140 = arith.addf %133, %139 : vector<8x128xf32>
    %cst_42 = arith.constant 0.797884583 : f32
    %141 = vector.broadcast %cst_42 : f32 to vector<8x128xf32>
    %142 = arith.mulf %141, %140 : vector<8x128xf32>
    %143 = math.tanh %142 : vector<8x128xf32>
    %cst_43 = arith.constant 1.000000e+00 : f32
    %144 = vector.broadcast %cst_43 : f32 to vector<8x128xf32>
    %145 = arith.addf %144, %143 : vector<8x128xf32>
    %146 = arith.mulf %135, %145 : vector<8x128xf32>
    %147 = arith.truncf %146 : vector<8x128xf32> to vector<8x128xbf16>
    %c0_44 = arith.constant 0 : index
    %c0_45 = arith.constant 0 : index
    %148 = vector.load %arg12[%c0_44, %c0_45] : memref<128x32xbf16, #tpu.memory_space<vmem>>, vector<128x32xbf16>
    %cst_46 = arith.constant dense<0.000000e+00> : vector<8x32xf32>
    %149 = tpu.matmul %147, %148, %cst_46 {dimension_numbers = #tpu.dot_dimension_numbers<[1], [0], [0], [1], [0, 0, 1, 1], [], []>} : vector<8x128xbf16>, vector<128x32xbf16>, vector<8x32xf32> -> vector<8x32xf32>
    %c0_47 = arith.constant 0 : index
    %c0_48 = arith.constant 0 : index
    %150 = vector.load %arg13[%c0_47, %c0_48] : memref<1x32xf32, #tpu.memory_space<vmem>>, vector<1x32xf32>
    %151 = vector.broadcast %150 : vector<1x32xf32> to vector<8x32xf32>
    %152 = arith.addf %149, %151 : vector<8x32xf32>
    %153 = arith.addf %103, %152 : vector<8x32xf32>
    %c0_49 = arith.constant 0 : index
    %c0_50 = arith.constant 0 : index
    %c0_51 = arith.constant 0 : index
    %154 = vector.load %arg14[%c0_49, %c0_50, %c0_51] : memref<1x8x32xf32, #tpu.memory_space<vmem>>, vector<1x8x32xf32>
    %155 = vector.shape_cast %154 : vector<1x8x32xf32> to vector<8x32xf32>
    %156 = vector.shape_cast %153 : vector<8x32xf32> to vector<1x8x32xf32>
    tpu.vector_store %arg14[%c0_49, %c0_50, %c0_51], %156 {strides = array<i32>} : memref<1x8x32xf32, #tpu.memory_space<vmem>>, vector<1x8x32xf32>,
    return
  }
  func.func @transform_0(%arg0: i32) -> (i32, i32, i32) {
    %c0_i32 = arith.constant 0 : i32
    %c0_i32_0 = arith.constant 0 : i32
    %c0_i32_1 = arith.constant 0 : i32
    return %arg0, %c0_i32, %c0_i32_0 : i32, i32, i32
  }
  func.func @transform_1(%arg0: i32) -> (i32, i32) {
    %c0_i32 = arith.constant 0 : i32
    %c0_i32_0 = arith.constant 0 : i32
    %c0_i32_1 = arith.constant 0 : i32
    return %c0_i32, %c0_i32_0 : i32, i32
  }
  func.func @transform_2(%arg0: i32) -> (i32, i32) {
    %c0_i32 = arith.constant 0 : i32
    %c0_i32_0 = arith.constant 0 : i32
    %c0_i32_1 = arith.constant 0 : i32
    return %c0_i32, %c0_i32_0 : i32, i32
  }
  func.func @transform_3(%arg0: i32) -> (i32, i32) {
    %c0_i32 = arith.constant 0 : i32
    %c0_i32_0 = arith.constant 0 : i32
    %c0_i32_1 = arith.constant 0 : i32
    return %c0_i32, %c0_i32_0 : i32, i32
  }
  func.func @transform_4(%arg0: i32) -> (i32, i32) {
    %c0_i32 = arith.constant 0 : i32
    %c0_i32_0 = arith.constant 0 : i32
    %c0_i32_1 = arith.constant 0 : i32
    return %c0_i32, %c0_i32_0 : i32, i32
  }
  func.func @transform_5(%arg0: i32) -> (i32, i32) {
    %c0_i32 = arith.constant 0 : i32
    %c0_i32_0 = arith.constant 0 : i32
    %c0_i32_1 = arith.constant 0 : i32
    return %c0_i32, %c0_i32_0 : i32, i32
  }
  func.func @transform_6(%arg0: i32) -> (i32, i32) {
    %c0_i32 = arith.constant 0 : i32
    %c0_i32_0 = arith.constant 0 : i32
    %c0_i32_1 = arith.constant 0 : i32
    return %c0_i32, %c0_i32_0 : i32, i32
  }
  func.func @transform_7(%arg0: i32) -> (i32, i32) {
    %c0_i32 = arith.constant 0 : i32
    %c0_i32_0 = arith.constant 0 : i32
    %c0_i32_1 = arith.constant 0 : i32
    return %c0_i32, %c0_i32_0 : i32, i32
  }
  func.func @transform_8(%arg0: i32) -> (i32, i32) {
    %c0_i32 = arith.constant 0 : i32
    %c0_i32_0 = arith.constant 0 : i32
    %c0_i32_1 = arith.constant 0 : i32
    return %c0_i32, %c0_i32_0 : i32, i32
  }
  func.func @transform_9(%arg0: i32) -> (i32, i32) {
    %c0_i32 = arith.constant 0 : i32
    %c0_i32_0 = arith.constant 0 : i32
    %c0_i32_1 = arith.constant 0 : i32
    return %c0_i32, %c0_i32_0 : i32, i32
  }
  func.func @transform_10(%arg0: i32) -> (i32, i32) {
    %c0_i32 = arith.constant 0 : i32
    %c0_i32_0 = arith.constant 0 : i32
    %c0_i32_1 = arith.constant 0 : i32
    return %c0_i32, %c0_i32_0 : i32, i32
  }
  func.func @transform_11(%arg0: i32) -> (i32, i32) {
    %c0_i32 = arith.constant 0 : i32
    %c0_i32_0 = arith.constant 0 : i32
    %c0_i32_1 = arith.constant 0 : i32
    return %c0_i32, %c0_i32_0 : i32, i32
  }
  func.func @transform_12(%arg0: i32) -> (i32, i32) {
    %c0_i32 = arith.constant 0 : i32
    %c0_i32_0 = arith.constant 0 : i32
    %c0_i32_1 = arith.constant 0 : i32
    return %c0_i32, %c0_i32_0 : i32, i32
  }
  func.func @transform_13(%arg0: i32) -> (i32, i32, i32) {
    %c0_i32 = arith.constant 0 : i32
    %c0_i32_0 = arith.constant 0 : i32
    %c0_i32_1 = arith.constant 0 : i32
    return %arg0, %c0_i32, %c0_i32_0 : i32, i32, i32
  }
}

</mosaic_0001>

<bundles_post_ra>
// kernel: tpu_custom_call.1
= control target key start
LH: loop header
LB: loop body
LE: loop exit
PB: predicated region body
PF: predicated region fallthrough
CT: control target
= control target key end

     0   :  { %s1597_s0 = inlined_call_operand.vmem [shape: f32[2,8,32], index: 0, kind: input, shape index: {}]   ;;  %s1598_s1 = inlined_call_operand.vmem [shape: f32[1,32], index: 1, kind: input, shape index: {}]   ;;  %s1599_s2 = inlined_call_operand.vmem [shape: f32[1,32], index: 2, kind: input, shape index: {}]   ;;  %s1600_s3 = inlined_call_operand.vmem [shape: bf16[32,96], index: 3, kind: input, shape index: {}]   ;;  %s1601_s4 = inlined_call_operand.vmem [shape: f32[1,96], index: 4, kind: input, shape index: {}]   ;;  %s1602_s5 = inlined_call_operand.vmem [shape: bf16[32,32], index: 5, kind: input, shape index: {}]   ;;  %s1603_s6 = inlined_call_operand.vmem [shape: f32[1,32], index: 6, kind: input, shape index: {}]   ;;  %s1604_s7 = inlined_call_operand.vmem [shape: f32[1,32], index: 7, kind: input, shape index: {}]   ;;  %s1605_s8 = inlined_call_operand.vmem [shape: f32[1,32], index: 8, kind: input, shape index: {}]   ;;  %s1606_s9 = inlined_call_operand.vmem [shape: bf16[32,128], index: 9, kind: input, shape index: {}]   ;;  %s1607_s10 = inlined_call_operand.vmem [shape: f32[1,128], index: 10, kind: input, shape index: {}]   ;;  %s1608_s11 = inlined_call_operand.vmem [shape: bf16[128,32], index: 11, kind: input, shape index: {}]   ;;  %s1609_s12 = inlined_call_operand.vmem [shape: f32[1,32], index: 12, kind: input, shape index: {}]   ;;  %s1610_s13 = inlined_call_operand.hbm [shape: f32[2,8,32], index: 13, kind: output, shape index: {}]  }
   0x1   :  { %1611 = sst [smem:[#allocation5_spill]] %s1597_s0 }
   0x2   :  { %1612 = sst [smem:[#allocation6_spill]] %s1598_s1 }
   0x3   :  { %1613 = sst [smem:[#allocation7_spill]] %s1599_s2 }
   0x4   :  { %1614 = sst [smem:[#allocation8_spill]] %s1600_s3 }
   0x5   :  { %18 = vsyncpa [#allocation3], 0 }
   0x6   :  { %20 = vsyncpa [#allocation3 + $0x1], 0  ;;  %s1391_s25 = smov 0   ;;  %s1393_s26 = smov 0  }
   0x7   :  { %s1395_s27 = smov 0   ;;  %s1397_s28 = smov 0  }
   0x8 LB: > { %s1412_s29 = sadd.s32 4294967295, %s1310_s28   ;;  %s1077_s30 = sadd.s32 4294967294, %s1310_s28   ;;  %s1310_s28 = sphi %s1397_s28, %s1624_s28   ;;  %s1306_s27 = sphi %s1395_s27, %s1623_s27   ;;  %s1302_s26 = sphi %s1393_s26, %s1622_s26   ;;  %s1298_s25 = sphi %s1391_s25, %s1621_s25  }
   0x9   : > { %s1416_s14 = sadd.s32 1, %s1310_s28   ;;  %s311_s15 = sadd.s32 1, %s1306_s27 }
   0xa   : > { %s308_s16 = ssub.s32 %s1310_s28, %s1416_s14  ;;  %p321_p0 = scmp.ne.s32.totalorder %s1306_s27, %s1302_s26 }
   0xb   : > { %p309_p1 = scmp.eq.s32.totalorder %s308_s16, 0  ;;  %p322_p2 = scmp.eq.s32.totalorder %s1412_s29, 1 }
   0xc   : > { %p327_p3 = scmp.ne.s32.totalorder %s1302_s26, %s1298_s25  ;;  %p328_p4 = scmp.eq.s32.totalorder %s1077_s30, 1 }
   0xd   : > { %s1427_s17 = scalar_select %p309_p1, %s1306_s27, %s311_s15  }
   0xe   : > { %p1429_p5 = por %p322_p2, %p321_p0  ;;  %p1433_p6 = por %p328_p4, %p327_p3 }
   0xf   : > { %p1080_p7 = scmp.ge.s32.totalorder %s1310_s28, 1  ;;  %p389_p8 = scmp.lt.s32.totalorder %s1310_s28, 3 }
  0x11   : > { %p390_p9 = pnand %p1080_p7, %p389_p8 }
  0x12   : > { %p432_p10 = scmp.lt.s32.totalorder (!%p390_p9), %s1412_s29, 1  ;;  %s1617_s0 = sld [smem:[#allocation5_spill]] (!%p390_p9) }
  0x13   : > { %393 = sbr.rel (%p390_p9) target bundleno = 1902 (0x76e), region = 72  ;;  %s1618_s3 = sld [smem:[#allocation8_spill]] (!%p390_p9) }
  0x14   : > { %s1619_s1 = sld [smem:[#allocation6_spill]] (!%p390_p9)  ;;  %s1313_s16 = smov (!%p390_p9), 104  }
  0x15   : > { %s1620_s2 = sld [smem:[#allocation7_spill]] (!%p390_p9)  ;;  %s1316_s22 = smov (!%p390_p9), 96  }
  0x16   : > { %s1317_s23 = smov (!%p390_p9), 64   ;;  %s1319_s30 = smov (!%p390_p9), 24  }
  0x17   : > { %s1320_s15 = smov (!%p390_p9), 16  }
  0x18   : > { %s433_s20 = scalar_select %p432_p10, %s1412_s29, 1  ;;  %vm440_vm0 = vcmask 261120   ;;  %v1312_v2 = vmov 32.0   ;;  %v1218_v32 = vld [vmem:[%s1601_s4] ss:$0 sm:$0xff]  ;;  %vm549_vm5 = vcmask 64512  }
  0x19   : > { %1224 = vrcp.f32 %v1312_v2  ;;  %v1155_v14 = vld [vmem:[%s1618_s3 + $0x8] sm:$0xff]  ;;  %v1154_v15 = vld [vmem:[%s1618_s3] sm:$0xff]  ;;  %vm697_vm7 = vcmask 1043456   ;;  %vm798_vm8 = vcmask 130048   ;;  %vm800_vm9 = vcmask 195584  }
  0x1a   : > { %s1082_s21 = sshll.u32 %s433_s20, 3  ;;  %508 = vmatpush.bf16.msra.mxu0 %v1155_v14  ;;  %v1216_v25 = vld [vmem:[%s1619_s1] ss:$0 sm:$0xff]  ;;  %s1314_s20 = smov 120  }
  0x1b   : > { %s435_s24 = scalar_lea.vmem %s1617_s0, %s1082_s21  ;;  %v1217_v28 = vld [vmem:[%s1620_s2] ss:$0 sm:$0xff]  ;;  %s1315_s21 = smov 112  }
  0x1c   : > { %v1444_v0 = vld [vmem:[%s435_s24] sm:$0xff]  ;;  %s1318_s24 = smov 8   ;;  %s429_s0 = sand.u32 1, %s1302_s26  }
  0x1d   : > { %v441_v1 = vsel %vm440_vm0, %v1444_v0, 0.0  ;;  %s1081_s1 = sshll.u32 %s429_s0, 3 }
  0x1e   : > { %442 = vadd.xlane.f32.xlu0 %v441_v1  ;;  %509 = vmatpush.bf16.msra.mxu0 %v1154_v15 }
  0x1f   : > { %v1225_v3 = vpop.eup %1224 }
  0x20   : > { %v445_v4 = vmul.f32 32.0, %v1225_v3  ;;  %vm449_vm1 = vweird.f32 %v1225_v3 }
  0x22   : > { %v446_v5 = vsub.f32 1.0, %v445_v4  ;;  %v641_v4 = vlaneseq }
  0x24   : > { %v447_v6 = vmul.f32 %v1225_v3, %v446_v5  ;;  %v642_v5 = vshrl.u32 %v641_v4, 7 }
  0x26   : > { %v448_v7 = vadd.f32 %v1225_v3, %v447_v6  ;;  %v644_v6 = vand.u32 127, %v641_v4 }
  0x28   : > { %v1448_v8 = vsel %vm449_vm1, %v1225_v3, %v448_v7  ;;  %vm645_vm6 = vcmp.le.s32.totalorder %v644_v6, %v642_v5 }
  0x91   : > { %v443_v9 = vpop.xlane.xlu0 %442 }
  0x92   : > { %v451_v10 = vmul.f32 %v1448_v8, %v443_v9 }
  0x94   : > { %v452_v11 = vsub.f32 %v1444_v0, %v451_v10 }
  0x96   : > { %v453_v12 = vmul.f32 %v452_v11, %v452_v11 }
  0x98   : > { %v454_v13 = vsel %vm440_vm0, %v453_v12, 0.0 }
  0x99   : > { %455 = vadd.xlane.f32.xlu0 %v454_v13 }
 0x10c   : > { %v456_v16 = vpop.xlane.xlu0 %455 }
 0x10d   : > { %v457_v17 = vmul.f32 %v456_v16, %v1448_v8 }
 0x10f   : > { %v458_v18 = vadd.f32 1e-05, %v457_v17 }
 0x111   : > { %1226 = vrsqrt.f32 %v458_v18  ;;  %vm465_vm3 = vweird.f32 %v458_v18 }
 0x117   : > { %v1227_v19 = vpop.eup %1226 }
 0x118   : > { %v460_v20 = vmul.f32 %v1227_v19, %v458_v18  ;;  %vm466_vm2 = vweird.f32 %v1227_v19 }
 0x119   : > { %vm467_vm4 = vmor %vm465_vm3, %vm466_vm2 }
 0x11a   : > { %v461_v21 = vmul.f32 %v1227_v19, %v460_v20 }
 0x11c   : > { %v462_v22 = vmul.f32 0.5, %v461_v21 }
 0x11e   : > { %v463_v23 = vsub.f32 1.5, %v462_v22 }
 0x120   : > { %v464_v24 = vmul.f32 %v1227_v19, %v463_v23 }
 0x122   : > { %v468_v26 = vsel %vm467_vm4, %v1227_v19, %v464_v24 }
 0x123   : > { %v469_v27 = vmul.f32 %v468_v26, %v452_v11 }
 0x125   : > { %v473_v29 = vmul.f32 %v1216_v25, %v469_v27 }
 0x127   : > { %v477_v30 = vadd.f32 %v1217_v28, %v473_v29 }
 0x129   : > { %v478_v31 = vpack.c.bf16 %v477_v30, %v477_v30 }
 0x12b   : > { %1091 = vmatmul.msk.bf16.vlgmr.msra.gmra.mxu0 %vm440_vm0, %v478_v31 }
 0x1a8   : > { %v511_v33 = vpop.f32.mrf.mxu0 }
 0x1a9   : > { %v512_v34 = vadd.f32 %v1218_v32, %v511_v33 }
 0x1ab   : > { %533 = vrot.lane.b32.xlu2 %v512_v34, %s1313_s16  ;;  %527 = vrot.lane.b32.xlu1 %v512_v34, %s1314_s20  ;;  %v515_v36 = vmul.f32 0.35355338, %v512_v34  ;;  %v540_v41 = vpack.c.bf16 %v512_v34, %v512_v34 }
 0x1ad   : > { %v545_v42 = vunpack.c.l.b16 %v540_v41  ;;  %v536_v61 = vpack.c.bf16 %v515_v36, %v515_v36 }
 0x1af   : > { %v546_v43 = vpack.c.b16 %v545_v42, %v545_v42 }
 0x1b0   : > { %v513_v35 = vpop.f32.mrf.mxu0 }
 0x1b3   : > { %530 = vrot.lane.b32.xlu1 %v512_v34, %s1315_s21 }
 0x1bb   : > { %517 = vrot.lane.b32.xlu1 %v515_v36, %s1314_s20 }
 0x205   : > { %v534_v37 = vpop.permute.xlu2 %533 }
 0x206   : > { %v543_v38 = vpack.c.bf16 %v534_v37, %v534_v37 }
 0x208   : > { %v618_v39 = vunpack.c.l.b16 %v543_v38 }
 0x20a   : > { %v619_v40 = vpack.c.b16 %v618_v39, %v618_v39 }
 0x20c   : > { %620 = vrot.lane.b32.xlu1 %v619_v40, %s1316_s22 }
 0x214   : > { %547 = vrot.lane.b32.xlu1 %v546_v43, %s1316_s22 }
 0x21d   : > { %v528_v44 = vpop.permute.xlu1 %527 }
 0x21e   : > { %v541_v45 = vpack.c.bf16 %v528_v44, %v528_v44 }
 0x220   : > { %v570_v46 = vunpack.c.l.b16 %v541_v45 }
 0x222   : > { %v571_v47 = vpack.c.b16 %v570_v46, %v570_v46 }
 0x224   : > { %572 = vrot.lane.b32.xlu2 %v571_v47, %s1316_s22 }
 0x225   : > { %v531_v48 = vpop.permute.xlu1 %530 }
 0x226   : > { %v542_v49 = vpack.c.bf16 %v531_v48, %v531_v48 }
 0x228   : > { %v594_v50 = vunpack.c.l.b16 %v542_v49 }
 0x22a   : > { %v595_v51 = vpack.c.b16 %v594_v50, %v594_v50 }
 0x22c   : > { %596 = vrot.lane.b32.xlu0 %v595_v51, %s1316_s22  ;;  %520 = vrot.lane.b32.xlu2 %v515_v36, %s1315_s21 }
 0x22d   : > { %v518_v52 = vpop.permute.xlu1 %517 }
 0x22e   : > { %v537_v57 = vpack.c.bf16 %v518_v52, %v518_v52 }
 0x234   : > { %523 = vrot.lane.b32.xlu2 %v515_v36, %s1313_s16 }
 0x27e   : > { %v573_v53 = vpop.permute.xlu2 %572  ;;  %v621_v54 = vpop.permute.xlu1 %620 }
 0x27f   : > { %v578_v55 = vsel %vm549_vm5, %v573_v53, 0  ;;  %v626_v56 = vsel %vm549_vm5, %v621_v54, 0 }
 0x280   : > { %587 = vmatpush.bf16.xpose.msra.mxu2 %v578_v55  ;;  %635 = vmatpush.bf16.xpose.msrb.mxu0 %v626_v56 }
 0x286   : > { %v521_v58 = vpop.permute.xlu2 %520  ;;  %v548_v59 = vpop.permute.xlu1 %547 }
 0x287   : > { %1093 = vmatmul.msk.bf16.vlgmr.msra.gmra.mxu2 %vm549_vm5, %v537_v57  ;;  %v554_v60 = vsel %vm549_vm5, %v548_v59, 0  ;;  %v538_v3 = vpack.c.bf16 %v521_v58, %v521_v58 }
 0x288   : > { %563 = vmatpush.bf16.xpose.msra.mxu1 %v554_v60 }
 0x28e   : > { %v524_v62 = vpop.permute.xlu2 %523 }
 0x28f   : > { %v539_v63 = vpack.c.bf16 %v524_v62, %v524_v62  ;;  %1092 = vmatmul.msk.bf16.vlgmr.msra.gmra.mxu1 %vm549_vm5, %v536_v61 }
 0x291   : > { %1095 = vmatmul.msk.bf16.vlgmr.msrb.gmra.mxu0 %vm549_vm5, %v539_v63 }
 0x29e   : > { %v597_v1 = vpop.permute.xlu0 %596 }
 0x29f   : > { %v602_v2 = vsel %vm549_vm5, %v597_v1, 0 }
 0x2a0   : > { %611 = vmatpush.bf16.xpose.msra.mxu3 %v602_v2 }
 0x2a7   : > { %1094 = vmatmul.msk.bf16.vlgmr.msra.gmra.mxu3 %vm549_vm5, %v538_v3 }
 0x30a   : > { %v589_v7 = vpop.f32.mrf.mxu2 }
 0x30b   : > { %v649_v9 = vsel %vm645_vm6, %v589_v7, -1e+30 }
 0x30c   : > { %v565_v10 = vpop.f32.mrf.mxu1  ;;  %v655_v11 = vsel %vm549_vm5, %v649_v9, -inf }
 0x30d   : > { %656 = vmax.xlane.f32.xlu2 %v655_v11  ;;  %v648_v22 = vsel %vm645_vm6, %v565_v10, -1e+30  ;;  %v1157_v11 = vld [vmem:[%s1602_s5 + $0x8] sm:$0xff] }
 0x30e   : > { %v637_v12 = vpop.f32.mrf.mxu0  ;;  %v652_v23 = vsel %vm549_vm5, %v648_v22, -inf }
 0x30f   : > { %v651_v13 = vsel %vm645_vm6, %v637_v12, -1e+30  ;;  %v1156_v12 = vld [vmem:[%s1602_s5] sm:$0xff] }
 0x310   : > { %v661_v14 = vsel %vm549_vm5, %v651_v13, -inf }
 0x311   : > { %662 = vmax.xlane.f32.xlu1 %v661_v14 }
 0x312   : > { %v591_v15 = vpop.f32.mrf.mxu2 }
 0x314   : > { %v567_v16 = vpop.f32.mrf.mxu1 }
 0x316   : > { %v639_v17 = vpop.f32.mrf.mxu0 }
 0x325   : > { %714 = vrot.lane.b32.xlu2 %v571_v47, %s1317_s23 }
 0x32a   : > { %v613_v18 = vpop.f32.mrf.mxu3  ;;  %756 = vrot.lane.b32.xlu1 %v619_v40, %s1317_s23 }
 0x32b   : > { %v650_v19 = vsel %vm645_vm6, %v613_v18, -1e+30 }
 0x32c   : > { %v658_v20 = vsel %vm549_vm5, %v650_v19, -inf }
 0x32d   : > { %659 = vmax.xlane.f32.xlu0 %v658_v20 }
 0x332   : > { %v615_v21 = vpop.f32.mrf.mxu3 }
 0x341   : > { %735 = vrot.lane.b32.xlu0 %v595_v51, %s1317_s23 }
 0x349   : > { %692 = vrot.lane.b32.xlu0 %v546_v43, %s1317_s23  ;;  %s431_s23 = scalar_lea.vmem [#allocation2], %s1081_s1  ;;  %s1268_s1 = scalar_lea.hbm %s1610_s13, 16 }
 0x34e   : > { %653 = vmax.xlane.f32.xlu2 %v652_v23  ;;  %v1219_v23 = vld [vmem:[%s1603_s6] ss:$0 sm:$0xff] }
 0x380   : > { %v657_v24 = vpop.xlane.xlu2 %656 }
 0x381   : > { %v665_v25 = vsub.f32 %v649_v9, %v657_v24 }
 0x383   : > { %v670_v26 = vmul.f32 1.442695, %v665_v25 }
 0x384   : > { %v663_v27 = vpop.xlane.xlu1 %662 }
 0x385   : > { %1228 = vpow2.f32 %v670_v26  ;;  %v667_v28 = vsub.f32 %v651_v13, %v663_v27 }
 0x387   : > { %v674_v29 = vmul.f32 1.442695, %v667_v28 }
 0x388   : > { %v715_v30 = vpop.permute.xlu2 %714 }
 0x389   : > { %1230 = vpow2.f32 %v674_v29  ;;  %v720_v31 = vsel %vm697_vm7, %v715_v30, 0 }
 0x38a   : > { %729 = vmatpush.bf16.msrb.mxu2 %v720_v31 }
 0x38b   : > { %v1229_v32 = vpop.eup %1228 }
 0x38c   : > { %v679_v33 = vsel %vm549_vm5, %v1229_v32, 0.0  ;;  %v689_v34 = vpack.c.bf16 %v1229_v32, %v1229_v32 }
 0x38d   : > { %680 = vadd.xlane.f32.xlu0 %v679_v33 }
 0x38e   : > { %1097 = vmatmul.msk.bf16.vlgmr.msrb.gmra.mxu2 %vm549_vm5, %v689_v34  ;;  %v1159_v34 = vld [vmem:[%s1606_s9 + $0x8] sm:$0xff] }
 0x38f   : > { %v1231_v35 = vpop.eup %1230  ;;  %902 = vmatpush.bf16.msra.mxu2 %v1159_v34 }
 0x390   : > { %v685_v36 = vsel %vm549_vm5, %v1231_v35, 0.0  ;;  %v691_v39 = vpack.c.bf16 %v1231_v35, %v1231_v35  ;;  %v1167_v35 = vld [vmem:[%s1608_s11 + $0x38] sm:$0xff] }
 0x391   : > { %686 = vadd.xlane.f32.xlu2 %v685_v36 }
 0x39c   : > { %v757_v37 = vpop.permute.xlu1 %756 }
 0x39d   : > { %v762_v38 = vsel %vm697_vm7, %v757_v37, 0 }
 0x39e   : > { %771 = vmatpush.bf16.msra.mxu0 %v762_v38  ;;  %v1166_v38 = vld [vmem:[%s1608_s11 + $0x30] sm:$0xff] }
 0x3a0   : > { %v660_v40 = vpop.xlane.xlu0 %659 }
 0x3a1   : > { %v666_v41 = vsub.f32 %v650_v19, %v660_v40  ;;  %1099 = vmatmul.msk.bf16.vlgmr.msra.gmra.mxu0 %vm549_vm5, %v691_v39 }
 0x3a3   : > { %v672_v42 = vmul.f32 1.442695, %v666_v41 }
 0x3a5   : > { %1232 = vpow2.f32 %v672_v42 }
 0x3ab   : > { %v1233_v43 = vpop.eup %1232 }
 0x3ac   : > { %v682_v44 = vsel %vm549_vm5, %v1233_v43, 0.0  ;;  %v690_v47 = vpack.c.bf16 %v1233_v43, %v1233_v43 }
 0x3ad   : > { %683 = vadd.xlane.f32.xlu1 %v682_v44 }
 0x3b3   : > { %v736_v45 = vpop.permute.xlu0 %735 }
 0x3b4   : > { %v741_v46 = vsel %vm697_vm7, %v736_v45, 0 }
 0x3b5   : > { %750 = vmatpush.bf16.msrb.mxu3 %v741_v46 }
 0x3b8   : > { %1098 = vmatmul.msk.bf16.vlgmr.msrb.gmra.mxu3 %vm549_vm5, %v690_v47 }
 0x3b9   : > { %987 = vmatpush.bf16.msra.mxu3 %v1167_v35 }
 0x3bb   : > { %v693_v48 = vpop.permute.xlu0 %692 }
 0x3bc   : > { %v699_v49 = vsel %vm697_vm7, %v693_v48, 0  ;;  %v1221_v48 = vld [vmem:[%s1605_s8] ss:$0 sm:$0xff] }
 0x3bd   : > { %708 = vmatpush.bf16.msrb.mxu1 %v699_v49  ;;  %988 = vmatpush.bf16.msra.mxu3 %v1166_v38 }
 0x3c1   : > { %v654_v50 = vpop.xlane.xlu2 %653  ;;  %832 = vmatpush.bf16.msra.mxu1 %v1157_v11 }
 0x3c2   : > { %v664_v51 = vsub.f32 %v648_v22, %v654_v50 }
 0x3c4   : > { %v668_v52 = vmul.f32 1.442695, %v664_v51 }
 0x3c5   : > { %833 = vmatpush.bf16.msra.mxu1 %v1156_v12 }
 0x3c6   : > { %1234 = vpow2.f32 %v668_v52  ;;  %v1165_v52 = vld [vmem:[%s1608_s11 + $0x28] sm:$0xff] }
 0x3c7   : > { %989 = vmatpush.bf16.msra.mxu3 %v1165_v52 }
 0x3cc   : > { %v1235_v53 = vpop.eup %1234 }
 0x3cd   : > { %v676_v54 = vsel %vm549_vm5, %v1235_v53, 0.0  ;;  %v688_v55 = vpack.c.bf16 %v1235_v53, %v1235_v53  ;;  %v1164_v53 = vld [vmem:[%s1608_s11 + $0x20] sm:$0xff] }
 0x3ce   : > { %677 = vadd.xlane.f32.xlu2 %v676_v54  ;;  %990 = vmatpush.bf16.msra.mxu3 %v1164_v53  ;;  %v1163_v54 = vld [vmem:[%s1608_s11 + $0x18] sm:$0xff] }
 0x3cf   : > { %1096 = vmatmul.msk.bf16.vlgmr.msrb.gmra.mxu1 %vm549_vm5, %v688_v55  ;;  %v1162_v55 = vld [vmem:[%s1608_s11 + $0x10] sm:$0xff] }
 0x3d2   : > { %991 = vmatpush.bf16.msra.mxu3 %v1163_v54 }
 0x3d6   : > { %992 = vmatpush.bf16.msra.mxu3 %v1162_v55 }
 0x400   : > { %v681_v56 = vpop.xlane.xlu0 %680 }
 0x401   : > { %1236 = vrcp.f32 %v681_v56  ;;  %v1161_v56 = vld [vmem:[%s1608_s11 + $0x8] sm:$0xff] }
 0x402   : > { %993 = vmatpush.bf16.msra.mxu3 %v1161_v56 }
 0x404   : > { %v687_v60 = vpop.xlane.xlu2 %686 }
 0x405   : > { %1238 = vrcp.f32 %v687_v60 }
 0x407   : > { %v1237_v57 = vpop.eup %1236 }
 0x40b   : > { %v1239_v62 = vpop.eup %1238 }
 0x411   : > { %v731_v58 = vpop.f32.mrf.mxu2 }
 0x412   : > { %v782_v59 = vmul.f32 %v1237_v57, %v731_v58  ;;  %v1160_v57 = vld [vmem:[%s1608_s11] sm:$0xff] }
 0x413   : > { %994 = vmatpush.bf16.msra.mxu3 %v1160_v57  ;;  %v1222_v58 = vld [vmem:[%s1607_s10] ss:$0 sm:$0xff] }
 0x414   : > { %786 = vrot.lane.b32.xlu0 %v782_v59, %s1318_s24  ;;  %s1015_s24 = sshll.u32 %s431_s23, 4  ;;  %s1016_s24 = int_to_ptr.vmem [resolvable:$true] %s1015_s24 }
 0x419   : > { %v733_v61 = vpop.f32.mrf.mxu2 }
 0x41e   : > { %v773_v63 = vpop.f32.mrf.mxu0 }
 0x41f   : > { %v784_v1 = vmul.f32 %v1239_v62, %v773_v63 }
 0x420   : > { %v684_v3 = vpop.xlane.xlu1 %683 }
 0x421   : > { %794 = vrot.lane.b32.xlu2 %v784_v1, %s1319_s30  ;;  %1240 = vrcp.f32 %v684_v3  ;;  %s1151_s30 = sshll.u32 %s1412_s29, 3  ;;  %s1003_s29 = scalar_lea.sflag [#allocation3], %s429_s0 }
 0x422   : > { %s1013_s22 = scalar_lea.hbm %s1610_s13, %s1151_s30 }
 0x423   : > { %s1017_s2 = sshll.u32 %s1013_s22, 4  ;;  %s1018_s2 = int_to_ptr.hbm [resolvable:$true] %s1017_s2 }
 0x424   : > { %s1262_s3 = sshra.s32 %s1018_s2, 4  ;;  %s1263_s3 = int_to_ptr.hbm [resolvable:$true] %s1262_s3 }
 0x425   : > { %p1269_p0 = scmp.lt.s32.totalorder %s1263_s3, %s1610_s13 }
 0x426   : > { %v775_v2 = vpop.f32.mrf.mxu0 }
 0x427   : > { %v1241_v4 = vpop.eup %1240 }
 0x43b   : > { %v752_v5 = vpop.f32.mrf.mxu3 }
 0x43c   : > { %v783_v6 = vmul.f32 %v1241_v4, %v752_v5 }
 0x43e   : > { %790 = vrot.lane.b32.xlu1 %v783_v6, %s1320_s15  ;;  %s1264_s15 = scalar_lea.hbm %s1263_s3, 8 }
 0x43f   : > { %p1265_p11 = scmp.ne.s32.totalorder %s1263_s3, %s1264_s15  ;;  %p1270_p1 = scmp.lt.s32.totalorder %s1268_s1, %s1264_s15 }
 0x441   : > { %v678_v13 = vpop.xlane.xlu2 %677  ;;  %p1266_p12 = pnand %p1265_p11, %p1429_p5  ;;  %p1271_p2 = por %p1270_p1, %p1269_p0 }
 0x442   : > { %1242 = vrcp.f32 %v678_v13 }
 0x443   : > { %v754_v7 = vpop.f32.mrf.mxu3  ;;  %p1267_p13 = pneg %p1266_p12 }
 0x445   : > { %p1272_p3 = pnand %p1271_p2, %p1267_p13 }
 0x448   : > { %v1243_v14 = vpop.eup %1242 }
 0x44c   : > { %v710_v9 = vpop.f32.mrf.mxu1 }
 0x44d   : > { %v781_v16 = vmul.f32 %v1243_v14, %v710_v9 }
 0x454   : > { %v712_v10 = vpop.f32.mrf.mxu1 }
 0x455   : > { %v1223_v10 = vld [vmem:[%s1609_s12] ss:$0 sm:$0xff] }
 0x47b   : > { %v795_v19 = vpop.permute.xlu2 %794 }
 0x486   : > { %v787_v15 = vpop.permute.xlu0 %786 }
 0x487   : > { %v797_v17 = vsel %vm549_vm5, %v781_v16, %v787_v15 }
 0x4b0   : > { %v791_v18 = vpop.permute.xlu1 %790 }
 0x4b1   : > { %v799_v20 = vsel %vm798_vm8, %v797_v17, %v791_v18 }
 0x4b2   : > { %v801_v21 = vsel %vm800_vm9, %v799_v20, %v795_v19 }
 0x4b3   : > { %v802_v22 = vpack.c.bf16 %v801_v21, %v801_v21 }
 0x4b5   : > { %1108 = vmatmul.msk.bf16.vlgmr.msra.gmra.mxu1 %vm440_vm0, %v802_v22 }
 0x532   : > { %v835_v24 = vpop.f32.mrf.mxu1 }
 0x533   : > { %v836_v25 = vadd.f32 %v1219_v23, %v835_v24 }
 0x535   : > { %v1512_v26 = vadd.f32 %v836_v25, %v1444_v0  ;;  %v1158_v0 = vld [vmem:[%s1606_s9] sm:$0xff] }
 0x536   : > { %903 = vmatpush.bf16.msra.mxu2 %v1158_v0 }
 0x537   : > { %v842_v27 = vsel %vm440_vm0, %v1512_v26, 0.0 }
 0x538   : > { %843 = vadd.xlane.f32.xlu0 %v842_v27 }
 0x53a   : > { %v837_v28 = vpop.f32.mrf.mxu1 }
 0x5ab   : > { %v844_v29 = vpop.xlane.xlu0 %843 }
 0x5ac   : > { %v845_v30 = vmul.f32 %v844_v29, %v1448_v8 }
 0x5ae   : > { %v846_v31 = vsub.f32 %v1512_v26, %v845_v30 }
 0x5b0   : > { %v847_v32 = vmul.f32 %v846_v31, %v846_v31 }
 0x5b2   : > { %v848_v33 = vsel %vm440_vm0, %v847_v32, 0.0 }
 0x5b3   : > { %849 = vadd.xlane.f32.xlu1 %v848_v33 }
 0x626   : > { %v850_v36 = vpop.xlane.xlu1 %849 }
 0x627   : > { %v851_v37 = vmul.f32 %v850_v36, %v1448_v8  ;;  %v1220_v8 = vld [vmem:[%s1604_s7] ss:$0 sm:$0xff] }
 0x629   : > { %v852_v39 = vadd.f32 1e-05, %v851_v37 }
 0x62b   : > { %1244 = vrsqrt.f32 %v852_v39  ;;  %vm859_vm11 = vweird.f32 %v852_v39 }
 0x631   : > { %v1245_v40 = vpop.eup %1244 }
 0x632   : > { %v854_v41 = vmul.f32 %v1245_v40, %v852_v39  ;;  %vm860_vm10 = vweird.f32 %v1245_v40 }
 0x633   : > { %vm861_vm12 = vmor %vm859_vm11, %vm860_vm10 }
 0x634   : > { %v855_v42 = vmul.f32 %v1245_v40, %v854_v41 }
 0x636   : > { %v856_v43 = vmul.f32 0.5, %v855_v42 }
 0x638   : > { %v857_v44 = vsub.f32 1.5, %v856_v43 }
 0x63a   : > { %v858_v45 = vmul.f32 %v1245_v40, %v857_v44 }
 0x63c   : > { %v862_v46 = vsel %vm861_vm12, %v1245_v40, %v858_v45 }
 0x63d   : > { %v863_v47 = vmul.f32 %v862_v46, %v846_v31 }
 0x63f   : > { %v867_v49 = vmul.f32 %v1220_v8, %v863_v47 }
 0x641   : > { %v871_v50 = vadd.f32 %v1221_v48, %v867_v49 }
 0x643   : > { %v872_v51 = vpack.c.bf16 %v871_v50, %v871_v50 }
 0x645   : > { %1117 = vmatmul.msk.bf16.vlgmr.msra.gmra.mxu2 %vm440_vm0, %v872_v51 }
 0x6c8   : > { %v905_v59 = vpop.f32.mrf.mxu2 }
 0x6c9   : > { %v906_v60 = vadd.f32 %v1222_v58, %v905_v59 }
 0x6cb   : > { %v910_v61 = vmul.f32 %v906_v60, %v906_v60  ;;  %v909_v5 = vmul.f32 0.5, %v906_v60 }
 0x6cd   : > { %v911_v62 = vmul.f32 %v910_v61, %v906_v60 }
 0x6cf   : > { %v912_v63 = vmul.f32 0.044715, %v911_v62 }
 0x6d0   : > { %v907_v1 = vpop.f32.mrf.mxu2 }
 0x6d1   : > { %v913_v2 = vadd.f32 %v912_v63, %v906_v60 }
 0x6d3   : > { %v914_v3 = vmul.f32 0.7978846, %v913_v2 }
 0x6d5   : > { %1246 = vtanh.f32 %v914_v3 }
 0x6db   : > { %v1247_v4 = vpop.eup %1246 }
 0x6dc   : > { %v916_v6 = vadd.f32 1.0, %v1247_v4 }
 0x6de   : > { %v917_v7 = vmul.f32 %v916_v6, %v909_v5 }
 0x6e0   : > { %v918_v9 = vpack.c.bf16 %v917_v7, %v917_v7 }
 0x6e2   : > { %995 = vmatmul.bf16.vlgmr.msra.gmra.mxu3 %v918_v9 }
 0x765   : > { %v996_v11 = vpop.f32.mrf.mxu3 }
 0x766   : > { %v997_v12 = vadd.f32 %v1223_v10, %v996_v11 }
 0x768   : > { %v1000_v13 = vadd.f32 %v997_v12, %v1512_v26 }
 0x76a   : > { %1001 = vst.msk [vmem:[%s431_s23] sm:$0xff] %vm440_vm0, %v1000_v13 }
 0x76b   : > { %1275 = shalt.err (!%p1272_p3)
}
 0x76c   : > { %1168 = dma.vmem_to_hbm [thread:$0]  (%p1429_p5), %s1016_s24, 128, %s1018_s2, %s1003_s29  }
 0x76d   : > { %v998_v14 = vpop.f32.mrf.mxu3 }
 0x76e PF: > { %p1174_p4 = scmp.ge.s32.totalorder %s1310_s28, 2  ;;  %s1029_s0 = sand.u32 1, %s1298_s25  }
 0x76f   : > { %s1030_s22 = scalar_lea.sflag [#allocation3], %s1029_s0 }
 0x770   : > { %p1171_p7 = pnand %p1174_p4, %p1433_p6 }
 0x772   : > { %p1172_p8 = pneg %p1171_p7 }
 0x774   : > { %1293 = dma.done.wait (%p1172_p8), %s1030_s22, 128  }
 0x775   : > { %1295 = vsyncadd (%p1172_p8), %s1030_s22, 4294967168  ;;  %p23_p9 = scmp.ge.s32.totalorder %s1416_s14, 4   ;;  %s1621_s25 = smov %s1302_s26 }
 0x776   : > { %s1622_s26 = smov %s1306_s27  ;;  %s1623_s27 = smov %s1427_s17 }
 0x777   : > { %s1624_s28 = smov %s1416_s14  ;;  %25 = sbr.rel (!%p23_p9) target bundleno = 8 (0x8), region = 107 }
 0x77c   :  { %1036 = vsyncpa [#allocation3], 1 }
 0x77d   :  { %1038 = vsyncpa [#allocation3 + $0x1], 1 }

</bundles_post_ra>
